<compile_context>
chip_gen: v6e
topology: v6e:2x2x1
jax: 0.10.0
libtpu: 0.0.40
codegen_flags: <defaults>
</compile_context>

<pallas_src>
import functools

import jax
import jax.numpy as jnp
from jax.experimental import pallas as pl
from jax.experimental.pallas import tpu as pltpu

SMOOTH = 0.01


def _round_up(x, m):
    return (x + m - 1) // m * m


def _dice_partial_kernel(x_ref, t_ref, out_ref, *, hw, tile_hw):
    """Per-(batch, spatial-tile) partial Dice sums.

    x_ref  : (1, C, TILE_HW)  logits (native dtype, e.g. bf16)
    t_ref  : (1, 1, TILE_HW)  int32 class labels
    out_ref: (1, 1, 3, C)     f32 partials: [inter, sum_p, sum_onehot] per class
    """
    x = x_ref[0].astype(jnp.float32)            # (C, TILE_HW) f32
    labels = t_ref[0]                           # (1, TILE_HW) int32
    n_cls = x.shape[0]
    tile = pl.program_id(1)

    # --- softmax over the channel (sublane) axis (F.softmax(input, dim=1)) ---
    m = jnp.max(x, axis=0, keepdims=True)                        # (1, TILE_HW)
    e = jnp.exp(x - m)                                           # (C, TILE_HW)
    denom = jnp.sum(e, axis=0, keepdims=True)                    # (1, TILE_HW)
    p = e * pl.reciprocal(denom, approx=True)                    # (C, TILE_HW)

    # --- validity mask: last spatial tile may be padded past HW ---
    lane = jax.lax.broadcasted_iota(jnp.int32, (1, tile_hw), 1)
    valid = ((tile * tile_hw + lane) < hw).astype(jnp.float32)   # (1, TILE_HW)

    # --- fused OneHot(target) + masking (padded pixels match no class,
    #     padded softmax probs do not contribute to sum_p) ---
    c_idx = jax.lax.broadcasted_iota(jnp.int32, (n_cls, tile_hw), 0)
    onehot = (labels == c_idx).astype(jnp.float32) * valid       # (C, TILE_HW)
    p = p * valid

    # --- per-class lane reductions (partial sums for this tile) ---
    inter_c = jnp.sum(p * onehot, axis=1, keepdims=True)         # (C, 1)
    sump_c = jnp.sum(p, axis=1, keepdims=True)                   # (C, 1)
    sumt_c = jnp.sum(onehot, axis=1, keepdims=True)              # (C, 1)

    # --- relayout (C,1) sublane columns -> (1,C) lane-dense rows
    #     (uses only broadcast-multiply + sublane reduce; no 1-D temps) ---
    eye = (jax.lax.broadcasted_iota(jnp.int32, (n_cls, n_cls), 0) ==
           jax.lax.broadcasted_iota(jnp.int32, (n_cls, n_cls), 1)
           ).astype(jnp.float32)                                 # (C, C)

    def to_row(col):                                             # (C,1) -> (1,C)
        return jnp.sum(col * eye, axis=0, keepdims=True)

    out_ref[0, 0, 0:1, :] = to_row(inter_c)
    out_ref[0, 0, 1:2, :] = to_row(sump_c)
    out_ref[0, 0, 2:3, :] = to_row(sumt_c)


def soft_dice_loss(logits, target, n_classes, tile_hw=2048):
    """logits: (B, C, H, W) float (any float dtype); target: (B, 1, H, W) int labels."""
    B, C, H, W = logits.shape
    assert C == n_classes
    HW = H * W

    # Spatial tile: multiple of 128 lanes, no larger than (padded) HW.
    tile_hw = _round_up(max(128, min(tile_hw, _round_up(HW, 128))), 128)
    hw_pad = _round_up(HW, tile_hw)
    n_tiles = hw_pad // tile_hw

    x = logits.reshape(B, C, HW)                       # keep native dtype (bf16 ok)
    labels = target.reshape(B, 1, HW).astype(jnp.int32)
    # TODO(synk): labels could be shipped as int8 (C <= 127) to shave a little
    # more HBM traffic; kept int32 here for layout robustness.
    if hw_pad != HW:
        x = jnp.pad(x, ((0, 0), (0, 0), (0, hw_pad - HW)))
        labels = jnp.pad(labels, ((0, 0), (0, 0), (0, hw_pad - HW)))

    kernel = functools.partial(_dice_partial_kernel, hw=HW, tile_hw=tile_hw)

    parts = pl.pallas_call(
        kernel,
        out_shape=jax.ShapeDtypeStruct((B, n_tiles, 3, C), jnp.float32),
        grid=(B, n_tiles),
        in_specs=[
            pl.BlockSpec((1, C, tile_hw), lambda b, t: (b, 0, t)),
            pl.BlockSpec((1, 1, tile_hw), lambda b, t: (b, 0, t)),
        ],
        out_specs=pl.BlockSpec((1, 1, 3, C), lambda b, t: (b, t, 0, 0)),
        compiler_params=pltpu.CompilerParams(
            dimension_semantics=("parallel", "parallel")),
    )(x, labels)

    # Tiny final combine in plain JAX (a few KB of partials).
    sums = jnp.sum(parts, axis=1)                       # (B, 3, C)
    inter = sums[:, 0, :] + SMOOTH                      # (B, C)
    union = sums[:, 1, :] + sums[:, 2, :] + SMOOTH      # (B, C)
    score = jnp.sum(2.0 * inter / union)
    return 1.0 - score / (float(B) * float(C))


def _reference(logits, target, n_classes):
    B, C, H, W = logits.shape
    p = jax.nn.softmax(logits.astype(jnp.float32), axis=1).reshape(B, C, -1)
    onehot = jax.nn.one_hot(target.reshape(B, -1), n_classes, dtype=jnp.float32)
    onehot = jnp.transpose(onehot, (0, 2, 1))           # (B, C, HW)
    inter = jnp.sum(p * onehot, axis=2) + SMOOTH
    union = jnp.sum(p, axis=2) + jnp.sum(onehot, axis=2) + SMOOTH
    score = jnp.sum(2.0 * inter / union)
    return 1.0 - score / (float(B) * float(C))


if __name__ == "__main__":
    key = jax.random.PRNGKey(0)
    k1, k2, k3, k4 = jax.random.split(key, 4)

    # Case 1: bf16 logits streamed natively into the kernel (B=2, C=4, 16x16).
    B, C, H, W = 2, 4, 16, 16
    logits = jax.random.normal(k1, (B, C, H, W), dtype=jnp.bfloat16)
    target = jax.random.randint(k2, (B, 1, H, W), 0, C, dtype=jnp.int32)
    loss = jax.block_until_ready(soft_dice_loss(logits, target, n_classes=C))
    ref = _reference(logits, target, C)
    assert jnp.allclose(loss, ref, atol=2e-3, rtol=2e-3), (loss, ref)

    # Case 2: f32 logits, HW not a tile multiple -> exercises tiling + masking.
    H2 = W2 = 15
    logits2 = jax.random.normal(k3, (B, C, H2, W2), dtype=jnp.float32)
    target2 = jax.random.randint(k4, (B, 1, H2, W2), 0, C, dtype=jnp.int32)
    loss2 = jax.block_until_ready(
        soft_dice_loss(logits2, target2, n_classes=C, tile_hw=128))
    ref2 = _reference(logits2, target2, C)
    assert jnp.allclose(loss2, ref2, atol=2e-3, rtol=2e-3), (loss2, ref2)

    print("KERNEL_OK")
</pallas_src>

<mosaic_0001>
module attributes {stable_mosaic.version = 11 : i64} {
  func.func @_dice_partial_kernel(%arg0: i32, %arg1: i32, %arg2: memref<1x4x256xbf16, #tpu.memory_space<vmem>>, %arg3: memref<1x1x256xi32, #tpu.memory_space<vmem>>, %arg4: memref<1x1x3x4xf32, #tpu.memory_space<vmem>>) attributes {dimension_semantics = [#tpu.dimension_semantics<parallel>, #tpu.dimension_semantics<parallel>], iteration_bounds = array<i64: 2, 1>, scalar_prefetch = 0 : i64, scratch_operands = 0 : i64, tpu.core_type = #tpu.core_type<tc>, window_params = [{transform_indices = @transform_0, window_bounds = array<i64: 1, 4, 256>}, {transform_indices = @transform_1, window_bounds = array<i64: 1, 1, 256>}, {transform_indices = @transform_2, window_bounds = array<i64: 1, 1, 3, 4>}]} {
    %c0 = arith.constant 0 : index
    %c0_0 = arith.constant 0 : index
    %c0_1 = arith.constant 0 : index
    %0 = vector.load %arg2[%c0, %c0_0, %c0_1] : memref<1x4x256xbf16, #tpu.memory_space<vmem>>, vector<1x4x256xbf16>
    %1 = vector.shape_cast %0 : vector<1x4x256xbf16> to vector<4x256xbf16>
    %2 = arith.extf %1 : vector<4x256xbf16> to vector<4x256xf32>
    %c0_2 = arith.constant 0 : index
    %c0_3 = arith.constant 0 : index
    %c0_4 = arith.constant 0 : index
    %3 = vector.load %arg3[%c0_2, %c0_3, %c0_4] : memref<1x1x256xi32, #tpu.memory_space<vmem>>, vector<1x1x256xi32>
    %4 = vector.shape_cast %3 : vector<1x1x256xi32> to vector<1x256xi32>
    %cst = arith.constant dense<0xFF800000> : vector<256xf32>
    %5 = vector.multi_reduction <maximumf>, %2, %cst [0] : vector<4x256xf32> to vector<256xf32>
    %6 = vector.shape_cast %5 : vector<256xf32> to vector<1x256xf32>
    %7 = vector.broadcast %6 : vector<1x256xf32> to vector<4x256xf32>
    %8 = arith.subf %2, %7 : vector<4x256xf32>
    %9 = math.exp %8 : vector<4x256xf32>
    %cst_5 = arith.constant dense<0.000000e+00> : vector<256xf32>
    %10 = vector.multi_reduction <add>, %9, %cst_5 [0] : vector<4x256xf32> to vector<256xf32>
    %11 = vector.shape_cast %10 : vector<256xf32> to vector<1x256xf32>
    %12 = tpu.reciprocal %11 {approx = true} : vector<1x256xf32> -> vector<1x256xf32>
    %13 = vector.broadcast %12 : vector<1x256xf32> to vector<4x256xf32>
    %14 = arith.mulf %9, %13 : vector<4x256xf32>
    %15 = tpu.iota {dimensions = array<i32: 1>} : vector<1x256xi32>
    %c256_i32 = arith.constant 256 : i32
    %16 = arith.muli %arg1, %c256_i32 : i32
    %17 = vector.broadcast %16 : i32 to vector<1x256xi32>
    %18 = arith.addi %17, %15 : vector<1x256xi32>
    %c256_i32_6 = arith.constant 256 : i32
    %19 = vector.broadcast %c256_i32_6 : i32 to vector<1x256xi32>
    %20 = arith.cmpi slt, %18, %19 : vector<1x256xi32>
    %21 = arith.extui %20 : vector<1x256xi1> to vector<1x256xi32>
    %22 = arith.sitofp %21 : vector<1x256xi32> to vector<1x256xf32>
    %23 = tpu.iota {dimensions = array<i32: 0>} : vector<4x256xi32>
    %24 = vector.broadcast %4 : vector<1x256xi32> to vector<4x256xi32>
    %25 = arith.cmpi eq, %24, %23 : vector<4x256xi32>
    %26 = arith.extui %25 : vector<4x256xi1> to vector<4x256xi32>
    %27 = arith.sitofp %26 : vector<4x256xi32> to vector<4x256xf32>
    %28 = vector.broadcast %22 : vector<1x256xf32> to vector<4x256xf32>
    %29 = arith.mulf %27, %28 : vector<4x256xf32>
    %30 = vector.broadcast %22 : vector<1x256xf32> to vector<4x256xf32>
    %31 = arith.mulf %14, %30 : vector<4x256xf32>
    %32 = arith.mulf %31, %29 : vector<4x256xf32>
    %cst_7 = arith.constant dense<0.000000e+00> : vector<4xf32>
    %33 = vector.multi_reduction <add>, %32, %cst_7 [1] : vector<4x256xf32> to vector<4xf32>
    %34 = vector.shape_cast %33 : vector<4xf32> to vector<4x1xf32>
    %cst_8 = arith.constant dense<0.000000e+00> : vector<4xf32>
    %35 = vector.multi_reduction <add>, %31, %cst_8 [1] : vector<4x256xf32> to vector<4xf32>
    %36 = vector.shape_cast %35 : vector<4xf32> to vector<4x1xf32>
    %cst_9 = arith.constant dense<0.000000e+00> : vector<4xf32>
    %37 = vector.multi_reduction <add>, %29, %cst_9 [1] : vector<4x256xf32> to vector<4xf32>
    %38 = vector.shape_cast %37 : vector<4xf32> to vector<4x1xf32>
    %39 = tpu.iota {dimensions = array<i32: 0>} : vector<4x4xi32>
    %40 = tpu.iota {dimensions = array<i32: 1>} : vector<4x4xi32>
    %41 = arith.cmpi eq, %39, %40 : vector<4x4xi32>
    %42 = arith.extui %41 : vector<4x4xi1> to vector<4x4xi32>
    %43 = arith.sitofp %42 : vector<4x4xi32> to vector<4x4xf32>
    %44 = vector.broadcast %34 : vector<4x1xf32> to vector<4x4xf32>
    %45 = arith.mulf %44, %43 : vector<4x4xf32>
    %cst_10 = arith.constant dense<0.000000e+00> : vector<4xf32>
    %46 = vector.multi_reduction <add>, %45, %cst_10 [0] : vector<4x4xf32> to vector<4xf32>
    %47 = vector.shape_cast %46 : vector<4xf32> to vector<1x4xf32>
    %c0_11 = arith.constant 0 : index
    %c0_12 = arith.constant 0 : index
    %c0_13 = arith.constant 0 : index
    %c0_14 = arith.constant 0 : index
    %48 = vector.load %arg4[%c0_11, %c0_12, %c0_13, %c0_14] : memref<1x1x3x4xf32, #tpu.memory_space<vmem>>, vector<1x1x1x4xf32>
    %49 = vector.shape_cast %48 : vector<1x1x1x4xf32> to vector<1x4xf32>
    %50 = vector.shape_cast %47 : vector<1x4xf32> to vector<1x1x1x4xf32>
    tpu.vector_store %arg4[%c0_11, %c0_12, %c0_13, %c0_14], %50 {strides = array<i32>} : memref<1x1x3x4xf32, #tpu.memory_space<vmem>>, vector<1x1x1x4xf32>,
    %51 = vector.broadcast %36 : vector<4x1xf32> to vector<4x4xf32>
    %52 = arith.mulf %51, %43 : vector<4x4xf32>
    %cst_15 = arith.constant dense<0.000000e+00> : vector<4xf32>
    %53 = vector.multi_reduction <add>, %52, %cst_15 [0] : vector<4x4xf32> to vector<4xf32>
    %54 = vector.shape_cast %53 : vector<4xf32> to vector<1x4xf32>
    %c0_16 = arith.constant 0 : index
    %c0_17 = arith.constant 0 : index
    %c1 = arith.constant 1 : index
    %c0_18 = arith.constant 0 : index
    %55 = vector.load %arg4[%c0_16, %c0_17, %c1, %c0_18] : memref<1x1x3x4xf32, #tpu.memory_space<vmem>>, vector<1x1x1x4xf32>
    %56 = vector.shape_cast %55 : vector<1x1x1x4xf32> to vector<1x4xf32>
    %57 = vector.shape_cast %54 : vector<1x4xf32> to vector<1x1x1x4xf32>
    tpu.vector_store %arg4[%c0_16, %c0_17, %c1, %c0_18], %57 {strides = array<i32>} : memref<1x1x3x4xf32, #tpu.memory_space<vmem>>, vector<1x1x1x4xf32>,
    %58 = vector.broadcast %38 : vector<4x1xf32> to vector<4x4xf32>
    %59 = arith.mulf %58, %43 : vector<4x4xf32>
    %cst_19 = arith.constant dense<0.000000e+00> : vector<4xf32>
    %60 = vector.multi_reduction <add>, %59, %cst_19 [0] : vector<4x4xf32> to vector<4xf32>
    %61 = vector.shape_cast %60 : vector<4xf32> to vector<1x4xf32>
    %c0_20 = arith.constant 0 : index
    %c0_21 = arith.constant 0 : index
    %c2 = arith.constant 2 : index
    %c0_22 = arith.constant 0 : index
    %62 = vector.load %arg4[%c0_20, %c0_21, %c2, %c0_22] : memref<1x1x3x4xf32, #tpu.memory_space<vmem>>, vector<1x1x1x4xf32>
    %63 = vector.shape_cast %62 : vector<1x1x1x4xf32> to vector<1x4xf32>
    %64 = vector.shape_cast %61 : vector<1x4xf32> to vector<1x1x1x4xf32>
    tpu.vector_store %arg4[%c0_20, %c0_21, %c2, %c0_22], %64 {strides = array<i32>} : memref<1x1x3x4xf32, #tpu.memory_space<vmem>>, vector<1x1x1x4xf32>,
    return
  }
  func.func @transform_0(%arg0: i32, %arg1: i32) -> (i32, i32, i32) {
    %c0_i32 = arith.constant 0 : i32
    %c0_i32_0 = arith.constant 0 : i32
    return %arg0, %c0_i32, %arg1 : i32, i32, i32
  }
  func.func @transform_1(%arg0: i32, %arg1: i32) -> (i32, i32, i32) {
    %c0_i32 = arith.constant 0 : i32
    %c0_i32_0 = arith.constant 0 : i32
    return %arg0, %c0_i32, %arg1 : i32, i32, i32
  }
  func.func @transform_2(%arg0: i32, %arg1: i32) -> (i32, i32, i32, i32) {
    %c0_i32 = arith.constant 0 : i32
    %c0_i32_0 = arith.constant 0 : i32
    %c0_i32_1 = arith.constant 0 : i32
    return %arg0, %arg1, %c0_i32, %c0_i32_0 : i32, i32, i32, i32
  }
}

</mosaic_0001>

<bundles_post_ra>
// kernel: tpu_custom_call.1
= control target key start
LH: loop header
LB: loop body
LE: loop exit
PB: predicated region body
PF: predicated region fallthrough
CT: control target
= control target key end

     0   :  { %7 = vsyncpa [#allocation3], 0  ;;  %s855_s0 = inlined_call_operand.hbm [shape: bf16[2,4,256], index: 0, kind: input, shape index: {}]   ;;  %s856_s1 = inlined_call_operand.hbm [shape: s32[2,1,256], index: 1, kind: input, shape index: {}]   ;;  %s857_s2 = inlined_call_operand.vmem [shape: f32[2,1,3,4], index: 2, kind: output, shape index: {}]  }
   0x1   :  { %9 = vsyncpa [#allocation3 + $0x1], 0 }
   0x2   :  { %10 = vsyncpa [#allocation5], 0 }
   0x3   :  { %12 = vsyncpa [#allocation5 + $0x1], 0  ;;  %s706_s9 = smov 0   ;;  %s708_s10 = smov 0  }
   0x4   :  { %s710_s11 = smov 0   ;;  %s712_s12 = smov 0  }
   0x5   :  { %s714_s13 = smov 0   ;;  %s716_s14 = smov 0  }
   0x6 LB: > { %s486_s15 = sadd.s32 4294967295, %s685_s14   ;;  %s30_s16 = sadd.s32 1, %s681_s13  ;;  %s685_s14 = sphi %s716_s14, %s18_s14   ;;  %s681_s13 = sphi %s714_s13, %s866_s13   ;;  %s677_s12 = sphi %s712_s12, %s865_s12   ;;  %s673_s11 = sphi %s710_s11, %s864_s11   ;;  %s669_s10 = sphi %s708_s10, %s863_s10   ;;  %s665_s9 = sphi %s706_s9, %s862_s9  }
   0x7   : > { %p32_p0 = scmp.ge.s32.totalorder %s30_s16, 2  ;;  %s39_s17 = sadd.s32 1, %s673_s11 }
   0x8   : > { %p46_p1 = scmp.ne.s32.totalorder %s673_s11, %s669_s10  ;;  %p47_p2 = scmp.eq.s32.totalorder %s685_s14, 0 }
   0x9   : > { %s868_s16 = smov (%p32_p0, %s30_s16), 0  ;;  %p52_p4 = scmp.ne.s32.totalorder %s669_s10, %s665_s9 }
   0xa   : > { %p742_p3 = por %p47_p2, %p46_p1  ;;  %s34_s19 = ssub.s32 %s681_s13, %s868_s16 }
   0xb   : > { %p53_p5 = scmp.eq.s32.totalorder %s486_s15, 0  ;;  %p37_p6 = scmp.eq.s32.totalorder %s34_s19, 0 }
   0xc   : > { %p518_p8 = scmp.lt.s32.totalorder %s685_s14, 2  ;;  %s758_s22 = sand.u32 1, %s673_s11  }
   0xd   : > { %p749_p7 = por %p53_p5, %p52_p4  ;;  %s505_s23 = sshll.u32 %s681_s13, 6 }
   0xe   : > { %s755_s21 = scalar_select %p37_p6, %s673_s11, %s39_s17  }
   0xf   : > { %s490_s24 = sshll.u32 %s758_s22, 2  ;;  %s144_s27 = scalar_lea.hbm %s855_s0, %s505_s23 }
  0x10   : > { %s136_s28 = scalar_lea.vmem [#allocation2], %s490_s24  ;;  %p767_p9 = pnand %p518_p8, %p742_p3 }
  0x11   : > { %s146_s29 = sshll.u32 %s136_s28, 4  ;;  %p496_p10 = scmp.ge.s32.totalorder %s685_s14, 1  ;;  %s147_s29 = int_to_ptr.vmem [resolvable:$true] %s146_s29 }
  0x12   : > { %p172_p11 = scmp.lt.s32.totalorder %s685_s14, 3  ;;  %s133_s3 = scalar_lea.sflag [#allocation3], %s758_s22 }
  0x13   : > { %p577_p12 = pneg %p767_p9  ;;  %s588_s4 = scalar_lea.vmem %s147_s29, 64 }
  0x14   : > { %p589_p13 = scmp.ne.s32.totalorder %s147_s29, %s588_s4  ;;  %s687_s5 = smov [#allocation2]  }
  0x15   : > { %s593_s6 = sshll.u32 %s687_s5, 4  ;;  %s594_s6 = int_to_ptr.vmem [resolvable:$false] %s593_s6 }
  0x16   : > { %p591_p0 = pnand %p589_p13, %p577_p12  ;;  %s595_s7 = scalar_lea.vmem %s594_s6, 128 }
  0x17   : > { %p596_p2 = scmp.lt.s32.totalorder %s147_s29, %s594_s6  ;;  %p597_p3 = scmp.lt.s32.totalorder %s595_s7, %s588_s4 }
  0x18   : > { %p592_p1 = pneg %p591_p0 }
  0x19   : > { %p598_p4 = por %p597_p3, %p596_p2 }
  0x1b   : > { %p599_p5 = pnand %p598_p4, %p592_p1 }
  0x1d   : > { %602 = shalt.err (!%p599_p5)
}
  0x1e   : > { %514 = dma.hbm_to_vmem [thread:$0]  (!%p767_p9), %s144_s27, 64, %s147_s29, %s133_s3  }
  0x1f   : > { %p785_p6 = pnand %p496_p10, %p172_p11  ;;  %s493_s9 = sshll.u32 %s758_s22, 1 }
  0x20   : > { %s506_s15 = sshll.u32 %s681_s13, 5  ;;  %s157_s23 = scalar_lea.vmem [#allocation4], %s493_s9 }
  0x21   : > { %s165_s19 = scalar_lea.hbm %s856_s1, %s506_s15  ;;  %s167_s24 = sshll.u32 %s157_s23, 4  ;;  %s168_s24 = int_to_ptr.vmem [resolvable:$true] %s167_s24 }
  0x22   : > { %s154_s25 = scalar_lea.sflag [#allocation5], %s758_s22  ;;  %s616_s26 = scalar_lea.vmem %s168_s24, 32 }
  0x23   : > { %p617_p8 = scmp.ne.s32.totalorder %s168_s24, %s616_s26  ;;  %s688_s27 = smov [#allocation4]  }
  0x24   : > { %s621_s28 = sshll.u32 %s688_s27, 4  ;;  %s622_s28 = int_to_ptr.vmem [resolvable:$false] %s621_s28 }
  0x25   : > { %p619_p13 = pnand %p617_p8, %p577_p12  ;;  %s623_s29 = scalar_lea.vmem %s622_s28, 64 }
  0x26   : > { %p624_p10 = scmp.lt.s32.totalorder %s168_s24, %s622_s28  ;;  %p625_p11 = scmp.lt.s32.totalorder %s623_s29, %s616_s26 }
  0x27   : > { %p620_p0 = pneg %p619_p13 }
  0x28   : > { %p626_p1 = por %p625_p11, %p624_p10 }
  0x2a   : > { %p627_p2 = pnand %p626_p1, %p620_p0 }
  0x2c   : > { %630 = shalt.err (!%p627_p2)
}
  0x2d   : > { %517 = dma.hbm_to_vmem [thread:$0]  (!%p767_p9), %s165_s19, 32, %s168_s24, %s154_s25  }
  0x2e   : > { %176 = sbr.rel (%p785_p6) target bundleno = 294 (0x126), region = 28  ;;  %s178_s22 = sand.u32 (!%p785_p6), 1, %s669_s10  }
  0x2f   : > { %s497_s3 = sshll.u32 (!%p785_p6), %s178_s22, 2  ;;  %s179_s4 = scalar_lea.sflag (!%p785_p6), [#allocation3], %s178_s22 }
  0x30   : > { %s182_s5 = scalar_lea.vmem (!%p785_p6), [#allocation2], %s497_s3 }
  0x33   : > { %656 = dma.done.wait (%p749_p7), %s179_s4, 64  }
  0x34   : > { %658 = vsyncadd (%p749_p7), %s179_s4, 4294967232  ;;  %s498_s6 = sshll.u32 %s178_s22, 1  ;;  %s188_s7 = scalar_lea.sflag [#allocation5], %s178_s22 }
  0x35   : > { %s191_s9 = scalar_lea.vmem [#allocation4], %s498_s6 }
  0x36   : > { %660 = dma.done.wait (%p749_p7), %s188_s7, 32  }
  0x37   : > { %662 = vsyncadd (%p749_p7), %s188_s7, 4294967264  ;;  %v280_v0 = vlaneseq  ;;  %v689_v5 = vmov 0.0   ;;  %v228_v7 = vld [vmem:[%s182_s5] sm:$0xf]  ;;  %v230_v8 = vld [vmem:[%s191_s9] sm:$0x3] }
  0x38   : > { %vm234_vm1 = vcmask 1043456   ;;  %v229_v9 = vunpack.c.l.bf16 %v228_v7  ;;  %v690_v55 = vmov 1.0   ;;  %vm346_vm4 = vcmask 27648   ;;  %p221_p7 = scmp.lt.s32.totalorder %s677_s12, 1 }
  0x39   : > { %v294_v1 = vshrl.u32 %v280_v0, 7  ;;  %v281_v2 = vand.u32 127, %v280_v0  ;;  %v313_v56 = vcombine.low %v690_v55, %v690_v55  ;;  %vm354_vm5 = vcmask 24576  }
  0x3a   : > { %v232_v12 = vcombine.high %v229_v9, %v229_v9  ;;  %v235_v13 = vsel %vm234_vm1, %v229_v9, -inf  ;;  %s870_s12 = smov (!%p221_p7, %s677_s12), 1 }
  0x3b   : > { %v297_v3 = vsub.s32 0, %v294_v1  ;;  %v301_v4 = vsub.s32 1, %v294_v1  ;;  %vm342_vm0 = vcmp.eq.s32.totalorder %v294_v1, %v281_v2  ;;  %v236_v16 = vrot.slane %v235_v13, 4  ;;  %s499_s20 = sshll.u32 %s870_s12, 2 }
  0x3c   : > { %v811_v6 = vsel %vm342_vm0, 1.0, %v689_v5  ;;  %v242_v20 = vsel %vm234_vm1, %v232_v12, -inf  ;;  %s227_s15 = scalar_lea.vmem %s857_s2, %s499_s20 }
  0x3d   : > { %v298_v10 = vrot.slane %v230_v8, %v297_v3  ;;  %v302_v11 = vrot.slane %v230_v8, %v301_v4  ;;  %v237_v22 = vmax.f32 %v235_v13, %v236_v16  ;;  %v243_v23 = vrot.slane %v242_v20, 4 }
  0x3f   : > { %vm303_vm2 = vcmp.eq.s32.totalorder %v298_v10, %v294_v1  ;;  %vm304_vm3 = vcmp.eq.s32.totalorder %v302_v11, %v294_v1  ;;  %v238_v24 = vrot.slane %v237_v22, 2  ;;  %v244_v25 = vmax.f32 %v242_v20, %v243_v23 }
  0x40   : > { %v500_v14 = vsel %vm303_vm2, 1.0, %v689_v5  ;;  %v501_v15 = vsel %vm304_vm3, 1.0, %v689_v5 }
  0x41   : > { %v337_v17 = vsel %vm234_vm1, %v500_v14, 0.0  ;;  %v338_v18 = vsel %vm234_vm1, %v501_v15, 0.0  ;;  %v318_v19 = vcombine.low %v500_v14, %v501_v15  ;;  %v239_v26 = vmax.f32 %v237_v22, %v238_v24 }
  0x42   : > { %v339_v21 = vadd.f32 %v338_v18, %v337_v17  ;;  %v245_v27 = vrot.slane %v244_v25, 2 }
  0x43   : > { %v240_v28 = vrot.slane %v239_v26, 1 }
  0x44   : > { %340 = vadd.xlane.f32.xlu1 %v339_v21  ;;  %v246_v29 = vmax.f32 %v244_v25, %v245_v27 }
  0x45   : > { %v241_v30 = vmax.f32 %v239_v26, %v240_v28 }
  0x46   : > { %v247_v31 = vrot.slane %v246_v29, 1 }
  0x48   : > { %v248_v32 = vmax.f32 %v246_v29, %v247_v31 }
  0x4a   : > { %v251_v33 = vcombine.low %v241_v30, %v248_v32 }
  0x4c   : > { %v253_v34 = vsub.f32 %v229_v9, %v251_v33 }
  0x4e   : > { %v254_v35 = vmul.f32 1.442695, %v253_v34 }
  0x50   : > { %569 = vpow2.f32 %v254_v35 }
  0x5d   : > { %v570_v36 = vpop.eup %569 }
  0x5e   : > { %v257_v37 = vcombine.high %v570_v36, %v570_v36  ;;  %v259_v38 = vsel %vm234_vm1, %v570_v36, 0.0 }
  0x5f   : > { %v260_v39 = vrot.slane %v259_v38, 4 }
  0x60   : > { %v266_v40 = vsel %vm234_vm1, %v257_v37, 0.0 }
  0x61   : > { %v261_v41 = vadd.f32 %v260_v39, %v259_v38  ;;  %v267_v42 = vrot.slane %v266_v40, 4 }
  0x63   : > { %v262_v43 = vrot.slane %v261_v41, 2  ;;  %v268_v44 = vadd.f32 %v267_v42, %v266_v40 }
  0x65   : > { %v263_v45 = vadd.f32 %v262_v43, %v261_v41  ;;  %v269_v46 = vrot.slane %v268_v44, 2 }
  0x67   : > { %v264_v47 = vrot.slane %v263_v45, 1  ;;  %v270_v48 = vadd.f32 %v269_v46, %v268_v44 }
  0x69   : > { %v265_v49 = vadd.f32 %v264_v47, %v263_v45  ;;  %v271_v50 = vrot.slane %v270_v48, 1 }
  0x6b   : > { %v272_v51 = vadd.f32 %v271_v50, %v270_v48  ;;  %571 = vrcp.f32 %v265_v49 }
  0x6d   : > { %573 = vrcp.f32 %v272_v51 }
  0x78   : > { %v572_v52 = vpop.eup %571 }
  0x7a   : > { %v574_v53 = vpop.eup %573 }
  0x7b   : > { %v277_v54 = vcombine.low %v572_v52, %v574_v53 }
  0x7d   : > { %v279_v57 = vmul.f32 %v570_v36, %v277_v54 }
  0x7f   : > { %v315_v58 = vmul.f32 %v313_v56, %v279_v57 }
  0x81   : > { %v320_v59 = vmul.f32 %v318_v19, %v315_v58  ;;  %v330_v60 = vcombine.high %v315_v58, %v315_v58  ;;  %v332_v0 = vsel %vm234_vm1, %v315_v58, 0.0 }
  0x83   : > { %v322_v61 = vcombine.high %v320_v59, %v320_v59  ;;  %v324_v62 = vsel %vm234_vm1, %v320_v59, 0.0  ;;  %v333_v1 = vsel %vm234_vm1, %v330_v60, 0.0 }
  0x84   : > { %v334_v3 = vadd.f32 %v333_v1, %v332_v0 }
  0x85   : > { %v325_v63 = vsel %vm234_vm1, %v322_v61, 0.0 }
  0x86   : > { %v326_v2 = vadd.f32 %v325_v63, %v324_v62 }
  0x88   : > { %327 = vadd.xlane.f32.xlu0 %v326_v2 }
  0x8c   : > { %335 = vadd.xlane.f32.xlu0 %v334_v3 }
  0xcd   : > { %v341_v4 = vpop.xlane.xlu1 %340 }
  0xce   : > { %v365_v5 = vmul.f32 %v811_v6, %v341_v4 }
  0xd0   : > { %v366_v7 = vsel %vm346_vm4, %v365_v5, 0.0 }
  0xd1   : > { %v367_v8 = vrot.slane %v366_v7, 4 }
  0xd3   : > { %v368_v9 = vadd.f32 %v367_v8, %v366_v7 }
  0xd5   : > { %v369_v10 = vrot.slane %v368_v9, 2 }
  0xd7   : > { %v370_v11 = vadd.f32 %v369_v10, %v368_v9 }
  0xd9   : > { %v371_v12 = vrot.slane %v370_v11, 1 }
  0xdb   : > { %v372_v13 = vadd.f32 %v371_v12, %v370_v11 }
  0xdd   : > { %373 = vst.msk [vmem:[%s227_s15 + $0x2] sm:$0x1] %vm354_vm5, %v372_v13 }
 0x111   : > { %v328_v14 = vpop.xlane.xlu0 %327 }
 0x112   : > { %v345_v15 = vmul.f32 %v811_v6, %v328_v14 }
 0x114   : > { %v347_v16 = vsel %vm346_vm4, %v345_v15, 0.0 }
 0x115   : > { %v348_v17 = vrot.slane %v347_v16, 4  ;;  %v336_v18 = vpop.xlane.xlu0 %335 }
 0x116   : > { %v356_v19 = vmul.f32 %v811_v6, %v336_v18 }
 0x117   : > { %v349_v20 = vadd.f32 %v348_v17, %v347_v16 }
 0x118   : > { %v357_v21 = vsel %vm346_vm4, %v356_v19, 0.0 }
 0x119   : > { %v350_v22 = vrot.slane %v349_v20, 2  ;;  %v358_v23 = vrot.slane %v357_v21, 4 }
 0x11b   : > { %v351_v24 = vadd.f32 %v350_v22, %v349_v20  ;;  %v359_v25 = vadd.f32 %v358_v23, %v357_v21 }
 0x11d   : > { %v352_v26 = vrot.slane %v351_v24, 1  ;;  %v360_v27 = vrot.slane %v359_v25, 2 }
 0x11f   : > { %v353_v28 = vadd.f32 %v352_v26, %v351_v24  ;;  %v361_v29 = vadd.f32 %v360_v27, %v359_v25 }
 0x121   : > { %355 = vst.msk [vmem:[%s227_s15] sm:$0x1] %vm354_vm5, %v353_v28  ;;  %v362_v30 = vrot.slane %v361_v29, 1 }
 0x123   : > { %v363_v31 = vadd.f32 %v362_v30, %v361_v29 }
 0x125   : > { %364 = vst.msk [vmem:[%s227_s15 + $0x1] sm:$0x1] %vm354_vm5, %v363_v31 }
 0x126 PF: > { %s18_s14 = sadd.s32 1, %s685_s14   ;;  %s862_s9 = smov %s669_s10 }
 0x127   : > { %p15_p9 = scmp.ge.s32.totalorder %s18_s14, 4   ;;  %s863_s10 = smov %s673_s11 }
 0x128   : > { %s864_s11 = smov %s755_s21  ;;  %s865_s12 = smov %s681_s13 }
 0x129   : > { %s866_s13 = smov %s868_s16  ;;  %17 = sbr.rel (!%p15_p9) target bundleno = 6 (0x6), region = 81 }
 0x12e   :  { %399 = vsyncpa [#allocation3], 1 }
 0x12f   :  { %401 = vsyncpa [#allocation3 + $0x1], 1 }
 0x130   :  { %402 = vsyncpa [#allocation5], 1 }
 0x131   :  { %404 = vsyncpa [#allocation5 + $0x1], 1 }

</bundles_post_ra>
